<compile_context>
chip_gen: v7x
topology: tpu7x:2x2x1
jax: 0.10.0
libtpu: 0.0.40
codegen_flags: <defaults>
</compile_context>

<pallas_src>
import functools
import math

import jax
import jax.numpy as jnp
from jax.experimental import pallas as pl
from jax.experimental.pallas import tpu as pltpu


def _sinusoidal_kernel(x_ref, o_ref, *, half_dim, dim, fold, log_scale):
    """x_ref: (tm, fold) timesteps ; o_ref: (tm, fold*dim) [sin | cos] rows.

    Uses cos(t) == sin(t + pi/2) so the full lane-dense output tile is produced
    by a single fused sin stream (same transcendental count, no concat copy).
    The tiny (1, out_cols) freq/phase rows are recomputed per grid step; that is
    < 1% of the tm*out_cols sins, so it stays in-register (review item 9).
    """
    x = x_ref[...].astype(jnp.float32)                               # (tm, fold)
    out_cols = fold * dim

    k = jax.lax.broadcasted_iota(jnp.int32, (1, out_cols), 1)
    if fold == 1:
        c = k                                                        # column in embedding
    else:
        # r0 = lane-group index (which folded row), c = column within one dim.
        # Built with compares (no vector int div/mod needed).
        r0 = jnp.zeros_like(k)
        for idx in range(1, fold):
            r0 = r0 + (k >= idx * dim).astype(jnp.int32)
        c = k - r0 * dim

    is_cos = c >= half_dim
    j = jnp.where(is_cos, c - half_dim, c).astype(jnp.float32)       # freq index
    freqs = jnp.exp(j * jnp.float32(-log_scale))                     # (1, out_cols)
    phase = jnp.where(is_cos, jnp.float32(math.pi / 2.0), jnp.float32(0.0))

    if fold == 1:
        xf = x                                                       # (tm, 1) broadcasts
    else:
        # Scatter the `fold` timesteps of each folded row across lane groups.
        xf = jnp.zeros((x.shape[0], out_cols), jnp.float32)
        for idx in range(fold):                                      # fold is tiny, static
            xf = xf + jnp.where(r0 == idx, x[:, idx:idx + 1], jnp.float32(0.0))

    o_ref[...] = jnp.sin(xf * freqs + phase).astype(o_ref.dtype)


def _round_up(v, m):
    return ((v + m - 1) // m) * m


@functools.partial(jax.jit, static_argnames=("dim", "out_dtype", "tm"))
def sinusoidal_pos_emb(x, dim, *, out_dtype=None, tm=1024):
    """x: (B,) timesteps (float or int). Returns (B, dim) = [sin | cos]."""
    assert x.ndim == 1, "expected a 1-D batch of timesteps"
    assert dim % 2 == 0 and dim >= 4, "dim must be even and >= 4"
    half_dim = dim // 2
    log_scale = math.log(10000.0) / (half_dim - 1)

    B = x.shape[0]
    if out_dtype is None:
        out_dtype = x.dtype if jnp.issubdtype(x.dtype, jnp.floating) else jnp.float32

    # Lane-dense folding for narrow embeddings: pack g rows per 128-lane output
    # row (free reshapes outside, per-lane selects inside the kernel).
    g = (128 + dim - 1) // dim if dim < 128 else 1
    if g > 1 and B % g != 0:
        g = 1                                       # un-foldable batch: fall back
    rows = B // g
    out_cols = g * dim

    # --- Row tile selection --------------------------------------------------
    out_bytes = jnp.dtype(out_dtype).itemsize
    if rows < 8:
        tm_eff = max(rows, 1)                       # full-extent first dim
    else:
        tm_eff = min(tm, max(8, (rows // 8) * 8))   # keep block <= array rows
        # v7x: ensure the ("parallel",) axis has >= 2 steps for mid/large batches
        # so work shards across both TensorCores (keep >= 256 rows per step).
        if rows >= 512:
            tm_eff = min(tm_eff, max(256, _round_up((rows + 1) // 2, 8)))
        # VMEM clamp: 2x double-buffered output + ~2 f32 intermediates per elem,
        # kept under ~12 MiB (safe for v5e 16 MiB scoped default / v7x 64 MiB).
        per_row_bytes = out_cols * (2 * out_bytes + 8) + 8 * g
        tm_vmem = max(8, ((12 * 1024 * 1024) // per_row_bytes) // 8 * 8)
        tm_eff = max(8, min(tm_eff, tm_vmem))

    x2d = x.reshape(rows, g)                        # metadata-only reshape

    kernel = functools.partial(
        _sinusoidal_kernel, half_dim=half_dim, dim=dim, fold=g, log_scale=log_scale)

    out = pl.pallas_call(
        kernel,
        out_shape=jax.ShapeDtypeStruct((rows, out_cols), out_dtype),
        grid_spec=pltpu.PrefetchScalarGridSpec(
            num_scalar_prefetch=0,
            grid=(pl.cdiv(rows, tm_eff),),          # ragged last block: no pad/slice
            in_specs=[pl.BlockSpec((tm_eff, g), lambda i: (i, 0))],
            out_specs=pl.BlockSpec((tm_eff, out_cols), lambda i: (i, 0)),
        ),
        compiler_params=pltpu.CompilerParams(
            dimension_semantics=("parallel",)),
    )(x2d)

    return out.reshape(B, dim)                      # metadata-only reshape back


def _reference(x, dim):
    half = dim // 2
    scale = math.log(10000.0) / (half - 1)
    freqs = jnp.exp(jnp.arange(half, dtype=jnp.float32) * -scale)
    arg = x.astype(jnp.float32)[:, None] * freqs[None, :]
    return jnp.concatenate([jnp.sin(arg), jnp.cos(arg)], axis=-1)


if __name__ == "__main__":
    key = jax.random.PRNGKey(0)

    # Primary: batch of 8 diffusion timesteps, dim=32 (folded, lane-dense path).
    B, dim = 8, 32
    x = jax.random.uniform(key, (B,), jnp.float32, 0.0, 1000.0)
    out = jax.block_until_ready(sinusoidal_pos_emb(x, dim))
    ref = _reference(x, dim)
    assert out.shape == (B, dim)
    assert jnp.allclose(out, ref, atol=2e-3, rtol=2e-3), "mismatch (folded path)"

    # Ragged, un-folded path: B not divisible by the fold factor.
    B2, dim2 = 10, 32
    x2 = jax.random.uniform(jax.random.fold_in(key, 1), (B2,), jnp.float32, 0.0, 1000.0)
    out2 = jax.block_until_ready(sinusoidal_pos_emb(x2, dim2))
    assert out2.shape == (B2, dim2)
    assert jnp.allclose(out2, _reference(x2, dim2), atol=2e-3, rtol=2e-3), \
        "mismatch (ragged path)"

    # Integer timesteps (common diffusion case): f32 output by default.
    B3, dim3 = 8, 64
    x3 = jax.random.randint(jax.random.fold_in(key, 2), (B3,), 0, 1000)
    out3 = jax.block_until_ready(sinusoidal_pos_emb(x3, dim3))
    assert out3.dtype == jnp.float32
    assert jnp.allclose(out3, _reference(x3, dim3), atol=2e-3, rtol=2e-3), \
        "mismatch (int timesteps)"

    print("KERNEL_OK")
</pallas_src>

<mosaic_0001>
module attributes {stable_mosaic.version = 11 : i64} {
  func.func @_sinusoidal_kernel(%arg0: i32, %arg1: memref<2x4xf32, #tpu.memory_space<vmem>>, %arg2: memref<2x128xf32, #tpu.memory_space<vmem>>) attributes {dimension_semantics = [#tpu.dimension_semantics<parallel>], iteration_bounds = array<i64: 1>, scalar_prefetch = 0 : i64, scratch_operands = 0 : i64, tpu.core_type = #tpu.core_type<tc>, window_params = [{transform_indices = @transform_0, window_bounds = array<i64: 2, 4>}, {transform_indices = @transform_1, window_bounds = array<i64: 2, 128>}]} {
    %c0 = arith.constant 0 : index
    %c0_0 = arith.constant 0 : index
    %0 = vector.load %arg1[%c0, %c0_0] : memref<2x4xf32, #tpu.memory_space<vmem>>, vector<2x4xf32>
    %1 = tpu.iota {dimensions = array<i32: 1>} : vector<1x128xi32>
    %c0_i32 = arith.constant 0 : i32
    %2 = vector.broadcast %c0_i32 : i32 to vector<1x128xi32>
    %c32_i32 = arith.constant 32 : i32
    %3 = vector.broadcast %c32_i32 : i32 to vector<1x128xi32>
    %4 = arith.cmpi sge, %1, %3 : vector<1x128xi32>
    %5 = arith.extui %4 : vector<1x128xi1> to vector<1x128xi32>
    %6 = arith.addi %2, %5 : vector<1x128xi32>
    %c64_i32 = arith.constant 64 : i32
    %7 = vector.broadcast %c64_i32 : i32 to vector<1x128xi32>
    %8 = arith.cmpi sge, %1, %7 : vector<1x128xi32>
    %9 = arith.extui %8 : vector<1x128xi1> to vector<1x128xi32>
    %10 = arith.addi %6, %9 : vector<1x128xi32>
    %c96_i32 = arith.constant 96 : i32
    %11 = vector.broadcast %c96_i32 : i32 to vector<1x128xi32>
    %12 = arith.cmpi sge, %1, %11 : vector<1x128xi32>
    %13 = arith.extui %12 : vector<1x128xi1> to vector<1x128xi32>
    %14 = arith.addi %10, %13 : vector<1x128xi32>
    %c32_i32_1 = arith.constant 32 : i32
    %15 = vector.broadcast %c32_i32_1 : i32 to vector<1x128xi32>
    %16 = arith.muli %14, %15 : vector<1x128xi32>
    %17 = arith.subi %1, %16 : vector<1x128xi32>
    %c16_i32 = arith.constant 16 : i32
    %18 = vector.broadcast %c16_i32 : i32 to vector<1x128xi32>
    %19 = arith.cmpi sge, %17, %18 : vector<1x128xi32>
    %c16_i32_2 = arith.constant 16 : i32
    %20 = vector.broadcast %c16_i32_2 : i32 to vector<1x128xi32>
    %21 = arith.subi %17, %20 : vector<1x128xi32>
    %22 = arith.select %19, %21, %17 : vector<1x128xi1>, vector<1x128xi32>
    %23 = arith.sitofp %22 : vector<1x128xi32> to vector<1x128xf32>
    %cst = arith.constant -0.614022672 : f32
    %24 = vector.broadcast %cst : f32 to vector<1x128xf32>
    %25 = arith.mulf %23, %24 : vector<1x128xf32>
    %26 = math.exp %25 : vector<1x128xf32>
    %cst_3 = arith.constant 1.57079637 : f32
    %cst_4 = arith.constant 0.000000e+00 : f32
    %27 = vector.broadcast %cst_3 : f32 to vector<1x128xf32>
    %28 = vector.broadcast %cst_4 : f32 to vector<1x128xf32>
    %29 = arith.select %19, %27, %28 : vector<1x128xi1>, vector<1x128xf32>
    %cst_5 = arith.constant 0.000000e+00 : f32
    %30 = vector.broadcast %cst_5 : f32 to vector<2x128xf32>
    %c0_i32_6 = arith.constant 0 : i32
    %31 = vector.broadcast %c0_i32_6 : i32 to vector<1x128xi32>
    %32 = arith.cmpi eq, %14, %31 : vector<1x128xi32>
    %33 = vector.extract_strided_slice %0 {offsets = [0, 0], sizes = [2, 1], strides = [1, 1]} : vector<2x4xf32> to vector<2x1xf32>
    %cst_7 = arith.constant 0.000000e+00 : f32
    %34 = vector.shape_cast %32 : vector<1x128xi1> to vector<1x128xi1>
    %35 = vector.broadcast %34 : vector<1x128xi1> to vector<2x128xi1>
    %36 = vector.shape_cast %33 : vector<2x1xf32> to vector<2x1xf32>
    %37 = vector.broadcast %36 : vector<2x1xf32> to vector<2x128xf32>
    %38 = vector.broadcast %cst_7 : f32 to vector<2x128xf32>
    %39 = arith.select %35, %37, %38 : vector<2x128xi1>, vector<2x128xf32>
    %40 = arith.addf %30, %39 : vector<2x128xf32>
    %c1_i32 = arith.constant 1 : i32
    %41 = vector.broadcast %c1_i32 : i32 to vector<1x128xi32>
    %42 = arith.cmpi eq, %14, %41 : vector<1x128xi32>
    %43 = vector.extract_strided_slice %0 {offsets = [0, 1], sizes = [2, 1], strides = [1, 1]} : vector<2x4xf32> to vector<2x1xf32>
    %cst_8 = arith.constant 0.000000e+00 : f32
    %44 = vector.shape_cast %42 : vector<1x128xi1> to vector<1x128xi1>
    %45 = vector.broadcast %44 : vector<1x128xi1> to vector<2x128xi1>
    %46 = vector.shape_cast %43 : vector<2x1xf32> to vector<2x1xf32>
    %47 = vector.broadcast %46 : vector<2x1xf32> to vector<2x128xf32>
    %48 = vector.broadcast %cst_8 : f32 to vector<2x128xf32>
    %49 = arith.select %45, %47, %48 : vector<2x128xi1>, vector<2x128xf32>
    %50 = arith.addf %40, %49 : vector<2x128xf32>
    %c2_i32 = arith.constant 2 : i32
    %51 = vector.broadcast %c2_i32 : i32 to vector<1x128xi32>
    %52 = arith.cmpi eq, %14, %51 : vector<1x128xi32>
    %53 = vector.extract_strided_slice %0 {offsets = [0, 2], sizes = [2, 1], strides = [1, 1]} : vector<2x4xf32> to vector<2x1xf32>
    %cst_9 = arith.constant 0.000000e+00 : f32
    %54 = vector.shape_cast %52 : vector<1x128xi1> to vector<1x128xi1>
    %55 = vector.broadcast %54 : vector<1x128xi1> to vector<2x128xi1>
    %56 = vector.shape_cast %53 : vector<2x1xf32> to vector<2x1xf32>
    %57 = vector.broadcast %56 : vector<2x1xf32> to vector<2x128xf32>
    %58 = vector.broadcast %cst_9 : f32 to vector<2x128xf32>
    %59 = arith.select %55, %57, %58 : vector<2x128xi1>, vector<2x128xf32>
    %60 = arith.addf %50, %59 : vector<2x128xf32>
    %c3_i32 = arith.constant 3 : i32
    %61 = vector.broadcast %c3_i32 : i32 to vector<1x128xi32>
    %62 = arith.cmpi eq, %14, %61 : vector<1x128xi32>
    %63 = vector.extract_strided_slice %0 {offsets = [0, 3], sizes = [2, 1], strides = [1, 1]} : vector<2x4xf32> to vector<2x1xf32>
    %cst_10 = arith.constant 0.000000e+00 : f32
    %64 = vector.shape_cast %62 : vector<1x128xi1> to vector<1x128xi1>
    %65 = vector.broadcast %64 : vector<1x128xi1> to vector<2x128xi1>
    %66 = vector.shape_cast %63 : vector<2x1xf32> to vector<2x1xf32>
    %67 = vector.broadcast %66 : vector<2x1xf32> to vector<2x128xf32>
    %68 = vector.broadcast %cst_10 : f32 to vector<2x128xf32>
    %69 = arith.select %65, %67, %68 : vector<2x128xi1>, vector<2x128xf32>
    %70 = arith.addf %60, %69 : vector<2x128xf32>
    %71 = vector.broadcast %26 : vector<1x128xf32> to vector<2x128xf32>
    %72 = arith.mulf %70, %71 : vector<2x128xf32>
    %73 = vector.broadcast %29 : vector<1x128xf32> to vector<2x128xf32>
    %74 = arith.addf %72, %73 : vector<2x128xf32>
    %75 = math.sin %74 : vector<2x128xf32>
    %c0_11 = arith.constant 0 : index
    %c0_12 = arith.constant 0 : index
    %76 = vector.load %arg2[%c0_11, %c0_12] : memref<2x128xf32, #tpu.memory_space<vmem>>, vector<2x128xf32>
    tpu.vector_store %arg2[%c0_11, %c0_12], %75 {strides = array<i32>} : memref<2x128xf32, #tpu.memory_space<vmem>>, vector<2x128xf32>,
    return
  }
  func.func @transform_0(%arg0: i32) -> (i32, i32) {
    %c0_i32 = arith.constant 0 : i32
    %c0_i32_0 = arith.constant 0 : i32
    return %arg0, %c0_i32 : i32, i32
  }
  func.func @transform_1(%arg0: i32) -> (i32, i32) {
    %c0_i32 = arith.constant 0 : i32
    %c0_i32_0 = arith.constant 0 : i32
    return %arg0, %c0_i32 : i32, i32
  }
}

</mosaic_0001>

<bundles_post_ra>
// kernel: sinusoidal_pos_emb.1
= control target key start
LH: loop header
LB: loop body
LE: loop exit
PB: predicated region body
PF: predicated region fallthrough
CT: control target
= control target key end

     0   :  { %v208_v0 = vmov 0   ;;  %v209_v2 = vmov 2   ;;  %v210_v3 = vmov 1   ;;  %v211_v4 = vmov 3   ;;  %s258_s0 = inlined_call_operand.vmem [shape: f32[2,4], index: 0, kind: input, shape index: {}]   ;;  %s259_s1 = inlined_call_operand.vmem [shape: f32[2,128], index: 1, kind: output, shape index: {}]  }
   0x1   :  { %197 = vset.pattern.permute.xlu0 %v208_v0  ;;  %v8_v1 = vld [vmem:[%s258_s0] sm:$0x3]  ;;  %199 = vset.pattern.permute.xlu1 %v209_v2  ;;  %v9_v5 = vlaneseq  ;;  %v212_v31 = vmov 0.0   ;;  %v213_v45 = vmov 683565275  }
   0x2   :  { %34 = vperm.xlu0 %197, %v8_v1   ;;  %52 = vperm.xlu1 %199, %v8_v1   ;;  %v214_v47 = vmov 2475754826   ;;  %v215_v50 = vmov 2131351028   ;;  %v216_v53 = vmov 2102212464  }
   0x3   :  { %v10_v6 = vand.u32 127, %v9_v5  ;;  %v217_v56 = vmov 920167782   ;;  %v218_v59 = vmov 1326507024  }
   0x5   :  { %vm11_vm0 = vcmp.ge.s32.totalorder %v10_v6, 32  ;;  %vm13_vm1 = vcmp.ge.s32.totalorder %v10_v6, 64  ;;  %vm16_vm2 = vcmp.ge.s32.totalorder %v10_v6, 96 }
   0x6   :  { %198 = vset.pattern.permute.xlu0 %v210_v3  ;;  %200 = vset.pattern.permute.xlu1 %v211_v4  ;;  %v12_v7 = vsel %vm11_vm0, 1, %v208_v0  ;;  %v14_v8 = vsel %vm13_vm1, 1, %v208_v0  ;;  %v17_v10 = vsel %vm16_vm2, 1, %v208_v0 }
   0x7   :  { %43 = vperm.xlu0 %198, %v8_v1   ;;  %61 = vperm.xlu1 %200, %v8_v1   ;;  %v15_v9 = vadd.s32 %v14_v8, %v12_v7 }
   0x9   :  { %v18_v11 = vadd.s32 %v17_v10, %v15_v9 }
   0xb   :  { %201 = vset.pattern.permute.xlu0 %v211_v4  ;;  %v19_v12 = vmul.u32 32, %v18_v11  ;;  %vm29_vm4 = vcmp.eq.s32.totalorder %v18_v11, 0  ;;  %vm39_vm5 = vcmp.eq.s32.totalorder %v18_v11, 1  ;;  %vm48_vm6 = vcmp.eq.s32.totalorder %v18_v11, 2 }
   0xc   :  { %vm57_vm7 = vcmp.eq.s32.totalorder %v18_v11, 3 }
   0xd   :  { %v20_v13 = vsub.s32 %v10_v6, %v19_v12 }
   0xf   :  { %v177_v14 = vadd.s32 4294967280, %v20_v13  ;;  %vm21_vm3 = vcmp.ge.s32.totalorder %v20_v13, 16 }
  0x10   :  { %v28_v32 = vsel %vm21_vm3, 1.5707964, %v212_v31 }
  0x11   :  { %v23_v15 = vsel %vm21_vm3, %v177_v14, %v20_v13 }
  0x12   :  { %v24_v16 = vcvt.s32.f32 %v23_v15 }
  0x14   :  { %v25_v17 = vmul.f32 -0.6140227, %v24_v16 }
  0x16   :  { %v26_v18 = vmul.f32 1.442695, %v25_v17 }
  0x18   :  { %202 = vpow2.f32 %v26_v18 }
  0x22   :  { %v203_v29 = vpop.eup %202 }
  0x81   :  { %v35_v19 = vpop.permute.xlu0 %34  ;;  %v53_v20 = vpop.permute.xlu1 %52 }
  0x82   :  { %v37_v23 = vsel %vm29_vm4, %v35_v19, 0.0  ;;  %v55_v26 = vsel %vm48_vm6, %v53_v20, 0.0 }
  0x86   :  { %v44_v21 = vpop.permute.xlu0 %43  ;;  %v62_v22 = vpop.permute.xlu1 %61 }
  0x87   :  { %v46_v24 = vsel %vm39_vm5, %v44_v21, 0.0  ;;  %v64_v27 = vsel %vm57_vm7, %v62_v22, 0.0 }
  0x88   :  { %v47_v25 = vadd.f32 %v46_v24, %v37_v23 }
  0x8a   :  { %v56_v28 = vadd.f32 %v55_v26, %v47_v25 }
  0x8c   :  { %v65_v30 = vadd.f32 %v64_v27, %v56_v28 }
  0x8e   :  { %v66_v33 = vmul.f32 %v203_v29, %v65_v30 }
  0x90   :  { %v234_v34 = vadd.f32 %v66_v33, %v28_v32 }
  0x92   :  { %v71_v35 = vand.u32 2139095040, %v234_v34  ;;  %v68_v39 = vand.u32 2147483647, %v234_v34  ;;  %vm70_vm15 = vcmp.lt.s32.totalorder %v234_v34, 0  ;;  %vm160_vm4 = vweird.f32 %v234_v34 }
  0x94   :  { %v72_v36 = vshrl.u32 %v71_v35, 23  ;;  %v75_v42 = vand.u32 8388607, %v68_v39  ;;  %vm69_vm0 = vcmp.le.f32.partialorder %v68_v39, 0.7853982 }
  0x96   :  { %v178_v37 = vadd.s32 4294967169, %v72_v36  ;;  %v76_v61 = vor.u32 8388608, %v75_v42 }
  0x98   :  { %v78_v38 = vadd.s32 1, %v178_v37  ;;  %v116_v11 = vshll.u32 %v76_v61, 8 }
  0x9a   :  { %vm79_vm8 = vcmp.gt.s32.totalorder %v78_v38, 0 }
  0x9b   :  { %v80_v40 = vsel %vm79_vm8, %v78_v38, 0 }
  0x9c   :  { %v82_v41 = vand.u32 31, %v80_v40  ;;  %v81_v44 = vshrl.u32 %v80_v40, 5 }
  0x9e   :  { %v83_v43 = vsub.s32 32, %v82_v41  ;;  %v85_v46 = vshll.u32 %v213_v45, %v82_v41  ;;  %v88_v48 = vshll.u32 %v214_v47, %v82_v41  ;;  %v91_v52 = vshll.u32 %v215_v50, %v82_v41 }
  0x9f   :  { %v94_v55 = vshll.u32 %v216_v53, %v82_v41  ;;  %v97_v58 = vshll.u32 %v217_v56, %v82_v41  ;;  %vm100_vm9 = vcmp.lt.s32.totalorder %v81_v44, 1  ;;  %vm103_vm10 = vcmp.lt.s32.totalorder %v81_v44, 4 }
  0xa0   :  { %v86_v49 = vshrl.u32 %v214_v47, %v83_v43  ;;  %v89_v51 = vshrl.u32 %v215_v50, %v83_v43  ;;  %v92_v54 = vshrl.u32 %v216_v53, %v83_v43  ;;  %v95_v57 = vshrl.u32 %v217_v56, %v83_v43 }
  0xa1   :  { %v98_v60 = vshrl.u32 %v218_v59, %v83_v43  ;;  %v84_v6 = vshrl.u32 %v213_v45, %v83_v43  ;;  %vm102_vm11 = vcmp.lt.s32.totalorder %v81_v44, 3  ;;  %vm101_vm12 = vcmp.lt.s32.totalorder %v81_v44, 2 }
  0xa2   :  { %v87_v62 = vor.u32 %v86_v49, %v85_v46  ;;  %v90_v63 = vor.u32 %v89_v51, %v88_v48  ;;  %v93_v0 = vor.u32 %v92_v54, %v91_v52  ;;  %v96_v1 = vor.u32 %v95_v57, %v94_v55 }
  0xa3   :  { %v99_v2 = vor.u32 %v98_v60, %v97_v58 }
  0xa4   :  { %v105_v3 = vsel %vm103_vm10, %v93_v0, 2102212464  ;;  %v108_v4 = vsel %vm100_vm9, %v87_v62, %v90_v63  ;;  %v112_v5 = vsel %vm100_vm9, %v90_v63, %v93_v0  ;;  %v109_v7 = vsel %vm103_vm10, %v96_v1, 920167782 }
  0xa5   :  { %v113_v8 = vsel %vm103_vm10, %v99_v2, 1326507024  ;;  %v110_v9 = vsel %vm102_vm11, %v93_v0, %v109_v7  ;;  %v104_v12 = vsel %vm100_vm9, %v84_v6, %v87_v62  ;;  %v106_v13 = vsel %vm102_vm11, %v90_v63, %v105_v3 }
  0xa6   :  { %v114_v10 = vsel %vm102_vm11, %v96_v1, %v113_v8  ;;  %v111_v14 = vsel %vm101_vm12, %v108_v4, %v110_v9  ;;  %v107_v20 = vsel %vm101_vm12, %v104_v12, %v106_v13 }
  0xa7   :  { %v115_v15 = vsel %vm101_vm12, %v112_v5, %v114_v10  ;;  %v243_v18 = vmul.u32.u64.low %v116_v11, %v111_v14  ;;  %v244_v19 = vmul.u32.u64.high %v116_v11, %v111_v14, %v243_v18  ;;  %v123_v22 = vmul.u32 %v116_v11, %v107_v20 }
  0xa8   :  { %v240_v16 = vmul.u32.u64.low %v116_v11, %v115_v15  ;;  %v241_v17 = vmul.u32.u64.high %v116_v11, %v115_v15, %v240_v16 }
  0xa9   :  { %v126_v21 = vadd.s32 1, %v244_v19 }
  0xaa   :  { %vm125_vm13 = vc.u32 %v241_v17, %v243_v18  ;;  %v124_v35 = vadd.s32 %v243_v18, %v241_v17 }
  0xab   :  { %v127_v23 = vsel %vm125_vm13, %v126_v21, %v244_v19 }
  0xac   :  { %v128_v24 = vadd.s32 %v127_v23, %v123_v22 }
  0xae   :  { %v129_v25 = vadd.s32 536870912, %v128_v24 }
  0xb0   :  { %v130_v26 = vshrl.u32 %v129_v25, 30 }
  0xb2   :  { %v131_v27 = vshll.u32 %v130_v26, 30  ;;  %v154_v48 = vsub.s32 4, %v130_v26 }
  0xb4   :  { %v132_v28 = vsub.s32 %v128_v24, %v131_v27  ;;  %v155_v51 = vsel %vm70_vm15, %v154_v48, %v130_v26 }
  0xb5   :  { %v157_v53 = vsel %vm69_vm0, 0, %v155_v51 }
  0xb6   :  { %v134_v29 = vsub.s32 0, %v132_v28  ;;  %v161_v54 = vadd.s32 3, %v157_v53 }
  0xb8   :  { %v179_v30 = vmin.u32 %v134_v29, %v132_v28  ;;  %v162_v55 = vand.u32 3, %v161_v54 }
  0xba   :  { %v136_v31 = vclz %v179_v30  ;;  %vm167_vm1 = vcmp.eq.s32.totalorder %v162_v55, 2  ;;  %vm164_vm2 = vcmp.eq.s32.totalorder %v162_v55, 0  ;;  %vm163_vm3 = vcmp.lt.s32.totalorder %v162_v55, 2 }
  0xbc   :  { %v180_v32 = vadd.s32 4294967294, %v136_v31 }
  0xbe   :  { %vm181_vm14 = vcmp.lt.s32.totalorder %v180_v32, 0 }
  0xbf   :  { %v139_v33 = vsel %vm181_vm14, 0, %v180_v32 }
  0xc0   :  { %v140_v36 = vsub.s32 32, %v139_v33  ;;  %v144_v37 = vsub.s32 4294967266, %v139_v33  ;;  %v141_v38 = vshll.u32 %v132_v28, %v139_v33 }
  0xc2   :  { %v142_v40 = vshrl.u32 %v124_v35, %v140_v36  ;;  %v145_v41 = vadd.s32 127, %v144_v37 }
  0xc4   :  { %v143_v42 = vor.u32 %v142_v40, %v141_v38  ;;  %v146_v43 = vshll.u32 %v145_v41, 23 }
  0xc6   :  { %v147_v44 = vor.u32 4788187, %v146_v43  ;;  %v150_v46 = vcvt.s32.f32 %v143_v42 }
  0xc8   :  { %v148_v45 = vand.u32 2147483647, %v147_v44 }
  0xca   :  { %v151_v47 = vmul.f32 %v150_v46, %v148_v45 }
  0xcc   :  { %v152_v49 = vxor.u32 2147483648, %v151_v47 }
  0xce   :  { %v153_v50 = vsel %vm70_vm15, %v152_v49, %v151_v47 }
  0xcf   :  { %v156_v52 = vsel %vm69_vm0, %v234_v34, %v153_v50 }
  0xd0   :  { %204 = vcosq.f32 %v156_v52 }
  0xd1   :  { %206 = vsinq.f32 %v156_v52 }
  0xda   :  { %v205_v56 = vpop.eup %204 }
  0xdb   :  { %v207_v57 = vpop.eup %206  ;;  %v168_v58 = vxor.u32 2147483648, %v205_v56 }
  0xdc   :  { %v165_v59 = vxor.u32 2147483648, %v207_v57 }
  0xdd   :  { %v169_v60 = vsel %vm167_vm1, %v168_v58, %v207_v57 }
  0xde   :  { %v166_v61 = vsel %vm164_vm2, %v205_v56, %v165_v59 }
  0xdf   :  { %v170_v39 = vsel %vm163_vm3, %v166_v61, %v169_v60 }
  0xe0   :  { %v171_v62 = vsel %vm160_vm4, nan, %v170_v39 }
  0xe1   :  { %172 = vst [vmem:[%s259_s1] sm:$0x3] %v171_v62 }

</bundles_post_ra>
